<compile_context>
chip_gen: v7x
topology: tpu7x:2x2x1
jax: 0.10.0
libtpu: 0.0.40
codegen_flags: <defaults>
</compile_context>

<pallas_src>
import jax
import jax.numpy as jnp
from jax.experimental import pallas as pl
from jax.experimental.pallas import tpu as pltpu


def _lin_attn_pool_kernel(key2_ref, val_ref, mask_ref,
                          w1_ref, b1_ref, w2_ref, wv_ref, out_ref):
    """One batch tile.

    key2_ref : (TB*S, H)  key rows, MXU dtype (bf16/f32)
    val_ref  : (TB, S, H) values, MXU dtype
    mask_ref : (TB, S)    f32 mask (1 = keep)
    w1_ref   : (H, 2H)    first score Linear, MXU dtype
    b1_ref   : (1, 2H)    f32
    w2_ref   : (1, 2H)    second score Linear weight row, f32
    wv_ref   : (H, H)     value_linear weight (pre-transposed), MXU dtype
    out_ref  : (TB, H)    f32
    """
    TB, S, H = val_ref.shape

    # ---- score MLP over every key row of this tile: one fused MXU matmul ----
    h1 = jnp.dot(key2_ref[...], w1_ref[...],
                 preferred_element_type=jnp.float32)          # (TB*S, 2H) f32
    h1 = jnp.maximum(h1 + b1_ref[...], 0.0)
    # out_features == 1  ->  VPU multiply + lane reduce instead of a width-1 matmul.
    t = h1 * w2_ref[...]                                      # (TB*S, 2H) f32
    scores = jnp.sum(t.reshape(TB, S, t.shape[-1]), axis=-1)  # (TB, S) lane-dense
    # (query score and b2 are uniform per-row shifts: softmax-invariant, dropped.)

    # ---- masked softmax over S (lanes), f32 throughout ----
    attn = scores - 1e30 * (1.0 - mask_ref[...])              # (TB, S)
    m = jnp.max(attn, axis=-1, keepdims=True)
    ex = jnp.exp(attn - m)
    inv = pl.reciprocal(jnp.sum(ex, axis=-1, keepdims=True), approx=True)
    prob = ex * inv                                           # (TB, S)

    # ---- pool first (VPU/XLU), project second (one tiny MXU matmul) ----
    v = val_ref[...].astype(jnp.float32)                      # (TB, S, H)
    pooled = jnp.sum(prob[:, :, None] * v, axis=1)            # (TB, H)
    out = jnp.dot(pooled.astype(wv_ref.dtype), wv_ref[...],
                  preferred_element_type=jnp.float32)         # (TB, H)
    out_ref[...] = out.astype(out_ref.dtype)


def _pick_batch_tile(B, max_tile):
    """Largest batch tile that divides B (multiple of 8 when tiling, else B)."""
    if B <= max_tile:
        return B
    tile = max_tile - (max_tile % 8)
    while tile >= 8:
        if B % tile == 0:
            return tile
        tile -= 8
    return B  # fall back to a single block


def linear_attention_pool(query, key, value, mask, params, *,
                          mxu_dtype=jnp.bfloat16, max_batch_tile=256):
    """params in torch nn.Linear layout:
       w1 (2H, H), b1 (2H,), w2 (1, 2H), b2 (1,), wv (H, H)."""
    w1, b1, w2, b2, wv = params
    B, S, H = key.shape

    # softmax is shift-invariant: the query score and b2 add a per-row constant and
    # cancel, so neither `query` nor b2 is read by the kernel.
    del query, b2

    TB = _pick_batch_tile(B, max_batch_tile)
    grid = (B // TB,)

    key2 = key.reshape(B * S, H).astype(mxu_dtype)            # fused score-MLP input
    val = value.astype(mxu_dtype)
    mask_f = mask.astype(jnp.float32)                         # (B, S) lane-dense
    w1_t = jnp.transpose(w1).astype(mxu_dtype)                # (H, 2H)
    b1_r = b1.reshape(1, 2 * H).astype(jnp.float32)
    w2_r = w2.reshape(1, 2 * H).astype(jnp.float32)
    wv_t = jnp.transpose(wv).astype(mxu_dtype)                # (H, H)

    itemsize = lambda a: a.size * a.dtype.itemsize
    flops = (2 * B * S * H * (2 * H)      # key-score matmul
             + 4 * B * S * H              # w2 VPU multiply + lane reduce
             + 2 * B * S * H              # weighted pooling
             + 2 * B * H * H)             # pooled @ Wv^T
    cost = pl.CostEstimate(
        flops=flops,
        transcendentals=B * S + B,        # exp + approx reciprocal
        bytes_accessed=(itemsize(key2) + itemsize(val) + itemsize(mask_f)
                        + itemsize(w1_t) + itemsize(b1_r) + itemsize(w2_r)
                        + itemsize(wv_t) + 4 * B * H))

    return pl.pallas_call(
        _lin_attn_pool_kernel,
        out_shape=jax.ShapeDtypeStruct((B, H), jnp.float32),
        grid=grid,
        in_specs=[
            pl.BlockSpec((TB * S, H), lambda i: (i, 0)),      # key rows (tiled)
            pl.BlockSpec((TB, S, H), lambda i: (i, 0, 0)),    # value     (tiled)
            pl.BlockSpec((TB, S), lambda i: (i, 0)),          # mask      (tiled)
            pl.BlockSpec((H, 2 * H), lambda i: (0, 0)),       # w1  (resident)
            pl.BlockSpec((1, 2 * H), lambda i: (0, 0)),       # b1  (resident)
            pl.BlockSpec((1, 2 * H), lambda i: (0, 0)),       # w2  (resident)
            pl.BlockSpec((H, H), lambda i: (0, 0)),           # wv  (resident)
        ],
        out_specs=pl.BlockSpec((TB, H), lambda i: (i, 0)),
        compiler_params=pltpu.CompilerParams(
            dimension_semantics=("parallel",)),
        cost_estimate=cost,
    )(key2, val, mask_f, w1_t, b1_r, w2_r, wv_t)


def linear_attention_pool_ref(query, key, value, mask, params):
    """Pure-JAX reference mirroring the torch forward (eval mode), all f32."""
    w1, b1, w2, b2, wv = params

    def key_score(x):
        h = jnp.maximum(x @ w1.T + b1, 0.0)
        return h @ w2.T + b2

    q_score = key_score(query)                 # (B, 1)
    k_score = key_score(key)[..., 0]           # (B, S)
    attn = k_score + q_score
    attn = attn - 1e30 * (1.0 - mask)
    prob = jax.nn.softmax(attn, axis=-1)       # (B, S)
    v_map = value @ wv.T                       # (B, S, H)
    return jnp.einsum('bs,bsh->bh', prob, v_map)


if __name__ == "__main__":
    rng = jax.random.PRNGKey(0)
    B, S, H = 2, 8, 32
    ks = jax.random.split(rng, 9)

    query = jax.random.normal(ks[0], (B, H), jnp.float32)
    key = jax.random.normal(ks[1], (B, S, H), jnp.float32)
    value = jax.random.normal(ks[2], (B, S, H), jnp.float32)
    mask = (jax.random.uniform(ks[3], (B, S)) > 0.3).astype(jnp.float32)
    mask = mask.at[:, 0].set(1.0)        # keep at least one valid key per row

    scale = 0.1
    # torch nn.Linear stores weight as (out_features, in_features).
    w1 = scale * jax.random.normal(ks[4], (2 * H, H), jnp.float32)
    b1 = scale * jax.random.normal(ks[5], (2 * H,), jnp.float32)
    w2 = scale * jax.random.normal(ks[6], (1, 2 * H), jnp.float32)
    b2 = scale * jax.random.normal(ks[7], (1,), jnp.float32)
    wv = scale * jax.random.normal(ks[8], (H, H), jnp.float32)   # value_linear, bias=False
    params = (w1, b1, w2, b2, wv)

    # TODO(synk): nn.Dropout(0.1) inside the score MLPs is eval-mode identity (omitted);
    # the module's `query_score` Sequential is never used by forward, so its parameters
    # are not created.
    ref = linear_attention_pool_ref(query, key, value, mask, params)

    # f32 MXU feed: tight check against the torch-faithful reference.
    out_f32 = linear_attention_pool(query, key, value, mask, params,
                                    mxu_dtype=jnp.float32)
    jax.block_until_ready(out_f32)
    assert out_f32.shape == (B, H)
    err32 = float(jnp.max(jnp.abs(out_f32 - ref)))
    assert jnp.allclose(out_f32, ref, rtol=5e-3, atol=5e-3), f"f32 max abs err {err32}"

    # bf16 MXU feed (default fast path): looser tolerance for bf16 operand rounding.
    out = linear_attention_pool(query, key, value, mask, params)
    jax.block_until_ready(out)
    assert out.shape == (B, H)
    err = float(jnp.max(jnp.abs(out - ref)))
    assert jnp.allclose(out, ref, rtol=2e-2, atol=2e-2), f"bf16 max abs err {err}"

    print("KERNEL_OK")
</pallas_src>

<mosaic_0001>
module attributes {stable_mosaic.version = 11 : i64} {
  func.func @_lin_attn_pool_kernel(%arg0: i32, %arg1: memref<16x32xf32, #tpu.memory_space<vmem>>, %arg2: memref<2x8x32xf32, #tpu.memory_space<vmem>>, %arg3: memref<2x8xf32, #tpu.memory_space<vmem>>, %arg4: memref<32x64xf32, #tpu.memory_space<vmem>>, %arg5: memref<1x64xf32, #tpu.memory_space<vmem>>, %arg6: memref<1x64xf32, #tpu.memory_space<vmem>>, %arg7: memref<32x32xf32, #tpu.memory_space<vmem>>, %arg8: memref<2x32xf32, #tpu.memory_space<vmem>>) attributes {dimension_semantics = [#tpu.dimension_semantics<parallel>], iteration_bounds = array<i64: 1>, scalar_prefetch = 0 : i64, scratch_operands = 0 : i64, tpu.core_type = #tpu.core_type<tc>, window_params = [{transform_indices = @transform_0, window_bounds = array<i64: 16, 32>}, {transform_indices = @transform_1, window_bounds = array<i64: 2, 8, 32>}, {transform_indices = @transform_2, window_bounds = array<i64: 2, 8>}, {pipeline_mode = #tpu.pipeline_mode<synchronous>, transform_indices = @transform_3, window_bounds = array<i64: 32, 64>}, {pipeline_mode = #tpu.pipeline_mode<synchronous>, transform_indices = @transform_4, window_bounds = array<i64: 1, 64>}, {pipeline_mode = #tpu.pipeline_mode<synchronous>, transform_indices = @transform_5, window_bounds = array<i64: 1, 64>}, {pipeline_mode = #tpu.pipeline_mode<synchronous>, transform_indices = @transform_6, window_bounds = array<i64: 32, 32>}, {transform_indices = @transform_7, window_bounds = array<i64: 2, 32>}]} {
    %c0 = arith.constant 0 : index
    %c0_0 = arith.constant 0 : index
    %0 = vector.load %arg1[%c0, %c0_0] : memref<16x32xf32, #tpu.memory_space<vmem>>, vector<16x32xf32>
    %c0_1 = arith.constant 0 : index
    %c0_2 = arith.constant 0 : index
    %1 = vector.load %arg4[%c0_1, %c0_2] : memref<32x64xf32, #tpu.memory_space<vmem>>, vector<32x64xf32>
    %cst = arith.constant dense<0.000000e+00> : vector<16x64xf32>
    %2 = tpu.matmul %0, %1, %cst {dimension_numbers = #tpu.dot_dimension_numbers<[1], [0], [0], [1], [0, 0, 1, 1], [], []>} : vector<16x32xf32>, vector<32x64xf32>, vector<16x64xf32> -> vector<16x64xf32>
    %c0_3 = arith.constant 0 : index
    %c0_4 = arith.constant 0 : index
    %3 = vector.load %arg5[%c0_3, %c0_4] : memref<1x64xf32, #tpu.memory_space<vmem>>, vector<1x64xf32>
    %4 = vector.broadcast %3 : vector<1x64xf32> to vector<16x64xf32>
    %5 = arith.addf %2, %4 : vector<16x64xf32>
    %cst_5 = arith.constant 0.000000e+00 : f32
    %6 = vector.broadcast %cst_5 : f32 to vector<16x64xf32>
    %7 = arith.maximumf %5, %6 : vector<16x64xf32>
    %c0_6 = arith.constant 0 : index
    %c0_7 = arith.constant 0 : index
    %8 = vector.load %arg6[%c0_6, %c0_7] : memref<1x64xf32, #tpu.memory_space<vmem>>, vector<1x64xf32>
    %9 = vector.broadcast %8 : vector<1x64xf32> to vector<16x64xf32>
    %10 = arith.mulf %7, %9 : vector<16x64xf32>
    %11 = vector.shape_cast %10 : vector<16x64xf32> to vector<2x8x64xf32>
    %cst_8 = arith.constant dense<0.000000e+00> : vector<2x8xf32>
    %12 = vector.multi_reduction <add>, %11, %cst_8 [2] : vector<2x8x64xf32> to vector<2x8xf32>
    %c0_9 = arith.constant 0 : index
    %c0_10 = arith.constant 0 : index
    %13 = vector.load %arg3[%c0_9, %c0_10] : memref<2x8xf32, #tpu.memory_space<vmem>>, vector<2x8xf32>
    %cst_11 = arith.constant 1.000000e+00 : f32
    %14 = vector.broadcast %cst_11 : f32 to vector<2x8xf32>
    %15 = arith.subf %14, %13 : vector<2x8xf32>
    %cst_12 = arith.constant 1.000000e+30 : f32
    %16 = vector.broadcast %cst_12 : f32 to vector<2x8xf32>
    %17 = arith.mulf %16, %15 : vector<2x8xf32>
    %18 = arith.subf %12, %17 : vector<2x8xf32>
    %cst_13 = arith.constant dense<0xFF800000> : vector<2xf32>
    %19 = vector.multi_reduction <maximumf>, %18, %cst_13 [1] : vector<2x8xf32> to vector<2xf32>
    %20 = vector.shape_cast %19 : vector<2xf32> to vector<2x1xf32>
    %21 = vector.broadcast %20 : vector<2x1xf32> to vector<2x8xf32>
    %22 = arith.subf %18, %21 : vector<2x8xf32>
    %23 = math.exp %22 : vector<2x8xf32>
    %cst_14 = arith.constant dense<0.000000e+00> : vector<2xf32>
    %24 = vector.multi_reduction <add>, %23, %cst_14 [1] : vector<2x8xf32> to vector<2xf32>
    %25 = vector.shape_cast %24 : vector<2xf32> to vector<2x1xf32>
    %26 = tpu.reciprocal %25 {approx = true} : vector<2x1xf32> -> vector<2x1xf32>
    %27 = vector.broadcast %26 : vector<2x1xf32> to vector<2x8xf32>
    %28 = arith.mulf %23, %27 : vector<2x8xf32>
    %c0_15 = arith.constant 0 : index
    %c0_16 = arith.constant 0 : index
    %c0_17 = arith.constant 0 : index
    %29 = vector.load %arg2[%c0_15, %c0_16, %c0_17] : memref<2x8x32xf32, #tpu.memory_space<vmem>>, vector<2x8x32xf32>
    %30 = vector.shape_cast %28 : vector<2x8xf32> to vector<2x8x1xf32>
    %31 = vector.broadcast %30 : vector<2x8x1xf32> to vector<2x8x32xf32>
    %32 = arith.mulf %31, %29 : vector<2x8x32xf32>
    %cst_18 = arith.constant dense<0.000000e+00> : vector<2x32xf32>
    %33 = vector.multi_reduction <add>, %32, %cst_18 [1] : vector<2x8x32xf32> to vector<2x32xf32>
    %c0_19 = arith.constant 0 : index
    %c0_20 = arith.constant 0 : index
    %34 = vector.load %arg7[%c0_19, %c0_20] : memref<32x32xf32, #tpu.memory_space<vmem>>, vector<32x32xf32>
    %cst_21 = arith.constant dense<0.000000e+00> : vector<2x32xf32>
    %35 = tpu.matmul %33, %34, %cst_21 {dimension_numbers = #tpu.dot_dimension_numbers<[1], [0], [0], [1], [0, 0, 1, 1], [], []>} : vector<2x32xf32>, vector<32x32xf32>, vector<2x32xf32> -> vector<2x32xf32>
    %c0_22 = arith.constant 0 : index
    %c0_23 = arith.constant 0 : index
    %36 = vector.load %arg8[%c0_22, %c0_23] : memref<2x32xf32, #tpu.memory_space<vmem>>, vector<2x32xf32>
    tpu.vector_store %arg8[%c0_22, %c0_23], %35 {strides = array<i32>} : memref<2x32xf32, #tpu.memory_space<vmem>>, vector<2x32xf32>,
    return
  }
  func.func @transform_0(%arg0: i32) -> (i32, i32) {
    %c0_i32 = arith.constant 0 : i32
    %c0_i32_0 = arith.constant 0 : i32
    return %arg0, %c0_i32 : i32, i32
  }
  func.func @transform_1(%arg0: i32) -> (i32, i32, i32) {
    %c0_i32 = arith.constant 0 : i32
    %c0_i32_0 = arith.constant 0 : i32
    %c0_i32_1 = arith.constant 0 : i32
    return %arg0, %c0_i32, %c0_i32_0 : i32, i32, i32
  }
  func.func @transform_2(%arg0: i32) -> (i32, i32) {
    %c0_i32 = arith.constant 0 : i32
    %c0_i32_0 = arith.constant 0 : i32
    return %arg0, %c0_i32 : i32, i32
  }
  func.func @transform_3(%arg0: i32) -> (i32, i32) {
    %c0_i32 = arith.constant 0 : i32
    %c0_i32_0 = arith.constant 0 : i32
    %c0_i32_1 = arith.constant 0 : i32
    return %c0_i32, %c0_i32_0 : i32, i32
  }
  func.func @transform_4(%arg0: i32) -> (i32, i32) {
    %c0_i32 = arith.constant 0 : i32
    %c0_i32_0 = arith.constant 0 : i32
    %c0_i32_1 = arith.constant 0 : i32
    return %c0_i32, %c0_i32_0 : i32, i32
  }
  func.func @transform_5(%arg0: i32) -> (i32, i32) {
    %c0_i32 = arith.constant 0 : i32
    %c0_i32_0 = arith.constant 0 : i32
    %c0_i32_1 = arith.constant 0 : i32
    return %c0_i32, %c0_i32_0 : i32, i32
  }
  func.func @transform_6(%arg0: i32) -> (i32, i32) {
    %c0_i32 = arith.constant 0 : i32
    %c0_i32_0 = arith.constant 0 : i32
    %c0_i32_1 = arith.constant 0 : i32
    return %c0_i32, %c0_i32_0 : i32, i32
  }
  func.func @transform_7(%arg0: i32) -> (i32, i32) {
    %c0_i32 = arith.constant 0 : i32
    %c0_i32_0 = arith.constant 0 : i32
    return %arg0, %c0_i32 : i32, i32
  }
}

</mosaic_0001>

<bundles_post_ra>
// kernel: tpu_custom_call.1
= control target key start
LH: loop header
LB: loop body
LE: loop exit
PB: predicated region body
PF: predicated region fallthrough
CT: control target
= control target key end

     0   :  { %12 = vsyncpa [#allocation3], 0  ;;  %s775_s0 = inlined_call_operand.hbm [shape: f32[16,32], index: 0, kind: input, shape index: {}]   ;;  %s776_s1 = inlined_call_operand.hbm [shape: f32[2,8,32], index: 1, kind: input, shape index: {}]   ;;  %s777_s2 = inlined_call_operand.vmem [shape: f32[2,8], index: 2, kind: input, shape index: {}]   ;;  %s778_s3 = inlined_call_operand.hbm [shape: f32[32,64], index: 3, kind: input, shape index: {}]   ;;  %s779_s4 = inlined_call_operand.vmem [shape: f32[1,64], index: 4, kind: input, shape index: {}]   ;;  %s780_s5 = inlined_call_operand.vmem [shape: f32[1,64], index: 5, kind: input, shape index: {}]   ;;  %s781_s6 = inlined_call_operand.hbm [shape: f32[32,32], index: 6, kind: input, shape index: {}]   ;;  %s782_s7 = inlined_call_operand.hbm [shape: f32[2,32], index: 7, kind: output, shape index: {}]  }
   0x1   :  { %13 = vsyncpa [#allocation6], 0 }
   0x2   :  { %14 = vsyncpa [#allocation9], 0 }
   0x3   :  { %15 = vsyncpa [#allocation4], 0  ;;  %s609_s24 = smov [#allocation5]   ;;  %s610_s26 = smov [#allocation2]  }
   0x4   :  { %s33_s25 = sshll.u32 %s609_s24, 4  ;;  %s21_s27 = sshll.u32 %s610_s26, 4  ;;  %s34_s25 = int_to_ptr.vmem [resolvable:$true] %s33_s25  ;;  %s660_s27 = int_to_ptr.vmem [resolvable:$true] %s21_s27 }
   0x5   :  { %s491_s30 = scalar_lea.hbm %s776_s1, 256 }
   0x6   :  { %p492_p0 = scmp.ne.s32.totalorder %s776_s1, %s491_s30  ;;  %p495_p1 = scmp.lt.u32.totalorder %s491_s30, %s776_s1 }
   0x8   :  { %p497_p2 = pnand %p495_p1, %p492_p0 }
   0xa   :  { %500 = shalt.err (!%p497_p2)
}
   0xb   :  { %s501_s12 = scalar_lea.vmem %s34_s25, 256  ;;  %p506_p4 = scmp.lt.s32.totalorder %s34_s25, %s34_s25 }
   0xc   :  { %p502_p3 = scmp.ne.s32.totalorder %s34_s25, %s501_s12  ;;  %p507_p5 = scmp.lt.s32.totalorder %s501_s12, %s501_s12 }
   0xe   :  { %p508_p6 = por %p507_p5, %p506_p4 }
  0x10   :  { %p509_p7 = pnand %p508_p6, %p502_p3 }
  0x12   :  { %512 = shalt.err (!%p509_p7)
}
  0x13   :  { %s611_s13 = smov 128   ;;  %s612_s14 = smov 8  }
  0x14   :  { %39 = dma.hbm_to_vmem [thread:$0]  %s776_s1, 256, %s34_s25, [#allocation6], %s611_s13, %s611_s13, %s612_s14  }
  0x15   :  { %s513_s19 = scalar_lea.hbm %s775_s0, 256 }
  0x16   :  { %p514_p8 = scmp.ne.s32.totalorder %s775_s0, %s513_s19  ;;  %p517_p9 = scmp.lt.u32.totalorder %s513_s19, %s775_s0 }
  0x18   :  { %p519_p10 = pnand %p517_p9, %p514_p8 }
  0x1a   :  { %522 = shalt.err (!%p519_p10)
}
  0x1b   :  { %s523_s24 = scalar_lea.vmem %s660_s27, 256  ;;  %p528_p12 = scmp.lt.s32.totalorder %s660_s27, %s660_s27 }
  0x1c   :  { %p524_p11 = scmp.ne.s32.totalorder %s660_s27, %s523_s24  ;;  %p529_p13 = scmp.lt.s32.totalorder %s523_s24, %s523_s24 }
  0x1e   :  { %p530_p0 = por %p529_p13, %p528_p12 }
  0x20   :  { %p531_p1 = pnand %p530_p0, %p524_p11 }
  0x22   :  { %534 = shalt.err (!%p531_p1)
}
  0x23   :  { %27 = dma.hbm_to_vmem [thread:$0]  %s775_s0, 256, %s660_s27, [#allocation3], %s611_s13, %s611_s13, %s612_s14  }
  0x24   :  { %s613_s26 = smov [#allocation7]   ;;  %s614_s29 = smov [#allocation8]  }
  0x25   :  { %s47_s28 = sshll.u32 %s613_s26, 4  ;;  %s63_s30 = sshll.u32 %s614_s29, 4  ;;  %s48_s28 = int_to_ptr.vmem [resolvable:$true] %s47_s28  ;;  %s697_s30 = int_to_ptr.vmem [resolvable:$true] %s63_s30 }
  0x26   :  { %s535_s10 = scalar_lea.hbm %s778_s3, 512 }
  0x27   :  { %p536_p2 = scmp.ne.s32.totalorder %s778_s3, %s535_s10  ;;  %p539_p3 = scmp.lt.u32.totalorder %s535_s10, %s778_s3 }
  0x29   :  { %p541_p4 = pnand %p539_p3, %p536_p2 }
  0x2b   :  { %544 = shalt.err (!%p541_p4)
}
  0x2c   :  { %s545_s0 = scalar_lea.vmem %s48_s28, 512  ;;  %p550_p6 = scmp.lt.s32.totalorder %s48_s28, %s48_s28 }
  0x2d   :  { %p546_p5 = scmp.ne.s32.totalorder %s48_s28, %s545_s0  ;;  %p551_p7 = scmp.lt.s32.totalorder %s545_s0, %s545_s0 }
  0x2f   :  { %p552_p8 = por %p551_p7, %p550_p6 }
  0x31   :  { %p553_p9 = pnand %p552_p8, %p546_p5 }
  0x33   :  { %556 = shalt.err (!%p553_p9)
}
  0x34   :  { %53 = dma.hbm_to_vmem [thread:$0]  %s778_s3, 512, %s48_s28, [#allocation6], %s611_s13, %s611_s13, %s612_s14  }
  0x35   :  { %s557_s20 = scalar_lea.hbm %s781_s6, 512 }
  0x36   :  { %p558_p10 = scmp.ne.s32.totalorder %s781_s6, %s557_s20  ;;  %p561_p11 = scmp.lt.u32.totalorder %s557_s20, %s781_s6 }
  0x38   :  { %p563_p12 = pnand %p561_p11, %p558_p10 }
  0x3a   :  { %566 = shalt.err (!%p563_p12)
}
  0x3b   :  { %s567_s1 = scalar_lea.vmem %s697_s30, 512  ;;  %p572_p0 = scmp.lt.s32.totalorder %s697_s30, %s697_s30 }
  0x3c   :  { %p568_p13 = scmp.ne.s32.totalorder %s697_s30, %s567_s1  ;;  %p573_p1 = scmp.lt.s32.totalorder %s567_s1, %s567_s1 }
  0x3e   :  { %p574_p2 = por %p573_p1, %p572_p0 }
  0x40   :  { %p575_p3 = pnand %p574_p2, %p568_p13 }
  0x42   :  { %578 = shalt.err (!%p575_p3)
}
  0x43   :  { %69 = dma.hbm_to_vmem [thread:$0]  %s781_s6, 512, %s697_s30, [#allocation9], %s611_s13, %s611_s13, %s612_s14  }
  0x44   :  { %601 = dma.done.wait [#allocation3], 256  }
  0x45   :  { %602 = vsyncadd [#allocation3], 4294967040 }
  0x46   :  { %603 = dma.done.wait [#allocation6], 768  }
  0x47   :  { %604 = vsyncadd [#allocation6], 4294966528 }
  0x48   :  { %605 = dma.done.wait [#allocation9], 512  }
  0x49   :  { %606 = vsyncadd [#allocation9], 4294966784  ;;  %vm95_vm0 = vcmask 261120   ;;  %v84_v0 = vld [vmem:[#allocation7] sm:$0xff]  ;;  %v85_v1 = vld [vmem:[#allocation7 + $0x8] sm:$0xff]  ;;  %v199_v9 = vlaneseq  ;;  %vm188_vm1 = vcmask 523264  }
  0x4a   :  { %v86_v2 = vld [vmem:[#allocation7 + $0x10] sm:$0xff]  ;;  %v458_v3 = vpack.c.bf16 %v85_v1, %v84_v0  ;;  %v87_v4 = vld [vmem:[#allocation7 + $0x18] sm:$0xff]  ;;  %v82_v5 = vld [vmem:[#allocation2] sm:$0xff]  ;;  %v615_v29 = vmov 0   ;;  %vm235_vm2 = vcmask 1041409   ;;  %vm238_vm3 = vcmask 58368  }
  0x4b   :  { %v462_v6 = vpack.c.bf16 %v87_v4, %v86_v2  ;;  %444 = vmatprep.mubr.msk.f32.mxu0 %vm95_vm0, %v82_v5  ;;  %v83_v7 = vld [vmem:[#allocation2 + $0x8] sm:$0xff]  ;;  %v195_v8 = vld [vmem:[%s777_s2] sm:$0x3]  ;;  %v200_v11 = vshrl.u32 %v199_v9, 7  ;;  %483 = vset.pattern.permute.xlu0 %v615_v29  ;;  %v226_v36 = vand.u32 127, %v199_v9  ;;  %v616_v4 = vmov 0.0|0.0  }
  0x4c   :  { %459 = vmatprep.subr.bf16.mxu0 %v458_v3  ;;  %v196_v10 = vsub.f32 1.0, %v195_v8  ;;  %v420_v17 = vld [vmem:[%s779_s4] ss:$0 sm:$0xff]  ;;  %484 = vset.pattern.permute.xlu1 %v615_v29  ;;  %v323_v2 = vld [vmem:[#allocation8 + $0x8] sm:$0xff]  ;;  %v324_v5 = vld [vmem:[#allocation8 + $0x10] sm:$0xff]  ;;  %vm617_vm4 = vmmov 0  }
  0x4d   :  { %461 = vmatpush3.bf16.msra.mxu0 %v458_v3  ;;  %v739_v13 = vsub.s32 0, %v200_v11  ;;  %v741_v14 = vsub.s32 1, %v200_v11  ;;  %v423_v22 = vld [vmem:[%s780_s5] ss:$0 sm:$0xff]  ;;  %v229_v37 = vsub.s32 %v226_v36, %v200_v11  ;;  %466 = vmatprep.subr.bf16.mxu1 %v616_v4  ;;  %v618_v8 = vmov 0.0   ;;  %v294_v9 = vld [vmem:[#allocation5] sm:$0xff] }
  0x4e   :  { %463 = vmatprep.subr.bf16.mxu0 %v462_v6  ;;  %v197_v12 = vmul.f32 1e+30, %v196_v10  ;;  %v322_v1 = vld [vmem:[#allocation8] sm:$0xff]  ;;  %455 = vmatprep.mubr.msk.f32.mxu1 %vm617_vm4, %v618_v8  ;;  %s619_s4 = smov [#allocation10]   ;;  %vm401_vm5 = vcmask 254976  }
  0x4f   :  { %v467_v3 = vpack.c.bf16 %v323_v2, %v322_v1  ;;  %s409_s5 = sshll.u32 %s619_s4, 4  ;;  %s410_s5 = int_to_ptr.vmem [resolvable:$true] %s409_s5 }
  0x50   :  { %v202_v15 = vrot.slane %v197_v12, %v739_v13  ;;  %v209_v16 = vrot.slane %v197_v12, %v741_v14  ;;  %v295_v12 = vld [vmem:[#allocation5 + $0x8] sm:$0xff]  ;;  %s579_s29 = scalar_lea.vmem %s410_s5, 32  ;;  %p584_p5 = scmp.lt.s32.totalorder %s410_s5, %s410_s5 }
  0x51   :  { %465 = vmatpush3.bf16.msra.mxu0 %v462_v6  ;;  %468 = vmatpush3.bf16.msra.mxu1 %v467_v3  ;;  %v325_v6 = vld [vmem:[#allocation8 + $0x18] sm:$0xff]  ;;  %p580_p4 = scmp.ne.s32.totalorder %s410_s5, %s579_s29  ;;  %p585_p6 = scmp.lt.s32.totalorder %s579_s29, %s579_s29 }
  0x52   :  { %204 = vbcast.lane.b32.xlu1 %v202_v15, 256  ;;  %469 = vmatprep.subr.bf16.mxu1 %v616_v4 }
  0x53   :  { %p586_p7 = por %p585_p6, %p584_p5 }
  0x54   :  { %445 = vmatmul.mubr.msk.f32.vlgmr.msra.gmra.mrb[0].mxu0 %vm95_vm0, %v83_v7  ;;  %v470_v7 = vpack.c.bf16 %v325_v6, %v324_v5 }
  0x55   :  { %p587_p8 = pnand %p586_p7, %p580_p4 }
  0x56   :  { %211 = vbcast.lane.b32.xlu1 %v209_v16, 256  ;;  %471 = vmatpush3.bf16.msra.mxu1 %v470_v7 }
  0xc4   :  { %v205_v30 = vpop.permute.xlu1 %204 }
  0xc8   :  { %v212_v33 = vpop.permute.xlu1 %211 }
 0x127   :  { %v446_v18 = vpop.f32.mrb[0].mxu0 }
 0x128   :  { %v174_v19 = vadd.f32 %v446_v18, %v420_v17  ;;  %v168_v20 = vpop.f32.mrb[1].mxu0 }
 0x129   :  { %v169_v21 = vadd.f32 %v420_v17, %v168_v20 }
 0x12a   :  { %v178_v23 = vmax.f32 %v174_v19, 0.0 }
 0x12b   :  { %v177_v24 = vmax.f32 %v169_v21, 0.0 }
 0x12c   :  { %v187_v27 = vmul.f32 %v423_v22, %v178_v23 }
 0x12d   :  { %v186_v25 = vmul.f32 %v423_v22, %v177_v24 }
 0x12e   :  { %v192_v28 = vsel %vm188_vm1, %v187_v27, 0.0 }
 0x12f   :  { %v189_v26 = vsel %vm188_vm1, %v186_v25, 0.0 }
 0x130   :  { %190 = vadd.xlane.f32.xlu0 %v189_v26 }
 0x134   :  { %193 = vadd.xlane.f32.xlu0 %v192_v28 }
 0x1bd   :  { %v191_v31 = vpop.xlane.xlu0 %190 }
 0x1be   :  { %v215_v32 = vsub.f32 %v191_v31, %v205_v30 }
 0x1c0   :  { %220 = vperm.xlu0 %483, %v215_v32  }
 0x1c1   :  { %v194_v34 = vpop.xlane.xlu0 %193 }
 0x1c2   :  { %v216_v35 = vsub.f32 %v194_v34, %v212_v33 }
 0x1c4   :  { %223 = vperm.xlu1 %484, %v216_v35  }
 0x23f   :  { %v221_v38 = vpop.permute.xlu0 %220 }
 0x240   :  { %v230_v40 = vrot.slane %v221_v38, %v229_v37 }
 0x243   :  { %v224_v39 = vpop.permute.xlu1 %223 }
 0x244   :  { %v234_v41 = vrot.slane %v224_v39, %v229_v37 }
 0x246   :  { %v236_v42 = vsel %vm235_vm2, %v234_v41, %v230_v40 }
 0x247   :  { %v239_v43 = vsel %vm238_vm3, %v236_v42, -inf }
 0x248   :  { %240 = vmax.xlane.f32.xlu1 %v239_v43 }
 0x2d5   :  { %v241_v44 = vpop.xlane.xlu1 %240 }
 0x2d6   :  { %v246_v45 = vrot.slane %v241_v44, %v739_v13  ;;  %v250_v46 = vrot.slane %v241_v44, %v741_v14 }
 0x2d8   :  { %v253_v47 = vsub.f32 %v215_v32, %v246_v45  ;;  %v254_v48 = vsub.f32 %v216_v35, %v250_v46 }
 0x2da   :  { %v255_v49 = vmul.f32 1.442695, %v253_v47  ;;  %v257_v50 = vmul.f32 1.442695, %v254_v48 }
 0x2dc   :  { %485 = vpow2.f32 %v255_v49 }
 0x2dd   :  { %487 = vpow2.f32 %v257_v50 }
 0x2e6   :  { %v486_v51 = vpop.eup %485 }
 0x2e7   :  { %v488_v52 = vpop.eup %487  ;;  %262 = vperm.xlu1 %484, %v486_v51  }
 0x2e8   :  { %265 = vperm.xlu0 %483, %v488_v52  }
 0x366   :  { %v263_v53 = vpop.permute.xlu1 %262 }
 0x367   :  { %v266_v54 = vpop.permute.xlu0 %265  ;;  %v270_v55 = vrot.slane %v263_v53, %v229_v37 }
 0x368   :  { %v274_v56 = vrot.slane %v266_v54, %v229_v37 }
 0x36a   :  { %v275_v57 = vsel %vm235_vm2, %v274_v56, %v270_v55 }
 0x36b   :  { %v277_v58 = vsel %vm238_vm3, %v275_v57, 0.0 }
 0x36c   :  { %278 = vadd.xlane.f32.xlu0 %v277_v58 }
 0x3f9   :  { %v279_v59 = vpop.xlane.xlu0 %278 }
 0x3fa   :  { %489 = vrcp.f32 %v279_v59 }
 0x404   :  { %v490_v60 = vpop.eup %489 }
 0x405   :  { %v285_v61 = vrot.slane %v490_v60, %v739_v13  ;;  %v289_v63 = vrot.slane %v490_v60, %v741_v14 }
 0x407   :  { %v292_v62 = vmul.f32 %v486_v51, %v285_v61  ;;  %v293_v0 = vmul.f32 %v488_v52, %v289_v63 }
 0x409   :  { %298 = vperm.xlu1 %484, %v292_v62  }
 0x40d   :  { %303 = vperm.xlu1 %484, %v293_v0  }
 0x488   :  { %v299_v10 = vpop.permute.xlu1 %298 }
 0x489   :  { %v306_v11 = vmul.f32 %v299_v10, %v294_v9 }
 0x48b   :  { %v308_v13 = vsel %vm95_vm0, %v306_v11, 0.0 }
 0x48c   :  { %v309_v14 = vrot.slane %v308_v13, 4  ;;  %v304_v15 = vpop.permute.xlu1 %303 }
 0x48d   :  { %v307_v16 = vmul.f32 %v304_v15, %v295_v12 }
 0x48e   :  { %v310_v17 = vadd.f32 %v309_v14, %v308_v13 }
 0x48f   :  { %v315_v18 = vsel %vm95_vm0, %v307_v16, 0.0 }
 0x490   :  { %v311_v19 = vrot.slane %v310_v17, 2  ;;  %v316_v20 = vrot.slane %v315_v18, 4 }
 0x492   :  { %v312_v21 = vadd.f32 %v311_v19, %v310_v17  ;;  %v317_v22 = vadd.f32 %v316_v20, %v315_v18 }
 0x494   :  { %v318_v23 = vrot.slane %v317_v22, 2  ;;  %v313_v24 = vrot.slane %v312_v21, 1 }
 0x496   :  { %v319_v25 = vadd.f32 %v318_v23, %v317_v22  ;;  %v314_v27 = vadd.f32 %v313_v24, %v312_v21 }
 0x498   :  { %v320_v26 = vrot.slane %v319_v25, 1 }
 0x49a   :  { %v321_v28 = vadd.f32 %v320_v26, %v319_v25 }
 0x49c   :  { %v328_v29 = vsel %vm235_vm2, %v321_v28, %v314_v27 }
 0x49d   :  { %456 = vmatmul.mubr.msk.f32.vlgmr.msra.gmra.mrb[0].mxu1 %vm95_vm0, %v328_v29 }
 0x570   :  { %v397_v30 = vpop.f32.mrb[0].mxu1 }
 0x571   :  { %v457_v31 = vpop.f32.mrb[1].mxu1  ;;  %402 = vst.msk [vmem:[#allocation10] sm:$0x3] %vm401_vm5, %v397_v30 }
 0x572   :  { %590 = shalt.err (!%p587_p8)
}
 0x573   :  { %s591_s9 = scalar_lea.hbm %s782_s7, 32 }
 0x574   :  { %p592_p9 = scmp.ne.s32.totalorder %s782_s7, %s591_s9  ;;  %p595_p10 = scmp.lt.u32.totalorder %s591_s9, %s782_s7 }
 0x576   :  { %p597_p11 = pnand %p595_p10, %p592_p9 }
 0x578   :  { %600 = shalt.err (!%p597_p11)
}
 0x579   :  { %412 = dma.vmem_to_hbm [thread:$0]  %s410_s5, 32, %s782_s7, [#allocation4]  }
 0x57a   :  { %607 = dma.done.wait [#allocation4], 32  }
 0x57b   :  { %608 = vsyncadd [#allocation4], 4294967264 }
 0x57c   :  { %416 = vsyncpa [#allocation3], 1 }
 0x57d   :  { %417 = vsyncpa [#allocation6], 1 }
 0x57e   :  { %418 = vsyncpa [#allocation9], 1 }
 0x57f   :  { %419 = vsyncpa [#allocation4], 1 }

</bundles_post_ra>
